<compile_context>
chip_gen: v5e
topology: v5e:2x2
jax: 0.10.0
libtpu: 0.0.40
codegen_flags: <defaults>
</compile_context>

<pallas_src>
import functools

import jax
import jax.numpy as jnp
from jax import lax
from jax.experimental import pallas as pl
from jax.experimental.pallas import tpu as pltpu

# bf16 feeds the MXU at peak on v6e/v7x (and is accepted on v5e) while all
# element-wise math below stays f32.  Use jnp.float32 for bit-faithful numerics.
MXU_DTYPE = jnp.bfloat16


# ----------------------------------------------------------------------------
# Fused kernel: one (batch element, layer) grid step of
#   x -> SLLRes(CenterNorm(Attention(LayerProject(x)) + x))
# ----------------------------------------------------------------------------
def transformer_kernel(x_ref, wqkv_ref, wo_ref, bo_ref, wfft_ref, wff_ref,
                       bff_ref, tff_ref, o_ref, att_ref,
                       *, heads, dim_head, cn_scale, radius):
    layer = pl.program_id(1)
    inner = heads * dim_head
    scale = float(dim_head) ** -0.5

    # Seed the VMEM-resident activation (o_ref) from the input at layer 0.
    @pl.when(layer == 0)
    def _():
        o_ref[...] = x_ref[...]

    x = o_ref[...].astype(jnp.float32)                       # (N, D)

    # --- PreNorm norm_fn = LayerProject(p='fro', radius=1.0, vector=False):
    #     Frobenius norm over (N, D) per batch element; divide only if >= radius.
    #     (where + clamped denominator avoids the 0*(x/0)=NaN edge case.)
    nrm = jnp.sqrt(jnp.sum(x * x, keepdims=True))             # (1, 1)
    inv_nrm = pl.reciprocal(jnp.maximum(nrm, 1e-12), approx=True)
    xp = x * jnp.where(nrm < radius, jnp.ones_like(nrm), inv_nrm)

    # --- Attention ----------------------------------------------------------
    # Fused q/k/v projection: a single (N, D) @ (D, 3*inner) MXU op.
    qkv = jnp.dot(xp.astype(wqkv_ref.dtype), wqkv_ref[...],
                  preferred_element_type=jnp.float32)          # (N, 3*inner)

    # Per-head softmax attention; head outputs land in an (N, inner) VMEM
    # scratch at static lane offsets so the output projection is one full
    # (N, inner) @ (inner, D) matmul.
    for h in range(heads):
        s = h * dim_head
        qh = qkv[:, s:s + dim_head]                            # (N, dh)
        kh = qkv[:, inner + s:inner + s + dim_head]
        vh = qkv[:, 2 * inner + s:2 * inner + s + dim_head]
        dots = lax.dot_general(qh, kh, (((1,), (1,)), ((), ())),
                               preferred_element_type=jnp.float32) * scale
        dots = dots - jnp.max(dots, axis=-1, keepdims=True)
        e = jnp.exp(dots)
        p = e * pl.reciprocal(jnp.sum(e, axis=-1, keepdims=True), approx=True)
        att_ref[:, s:s + dim_head] = jnp.dot(
            p, vh, preferred_element_type=jnp.float32)

    # to_out (SDPLin, heads=1, bias): single full-width matmul.
    attn_out = jnp.dot(att_ref[...].astype(wo_ref.dtype), wo_ref[...],
                       preferred_element_type=jnp.float32) + bo_ref[...]

    # --- outer residual: x = attn(LayerProject(x)) + x
    x1 = attn_out + x

    # --- PreNorm norm_fn = CenterNorm(D): center along last dim, scale D/(D-1)
    #     (weight fixed to ones; .squeeze() is a no-op for B,N,D > 1)
    xc = cn_scale * (x1 - jnp.mean(x1, axis=-1, keepdims=True))

    # --- SLLRes(dim, mlp): out = xc - W^T (T * relu(W xc + b))
    ff = jnp.dot(xc.astype(wfft_ref.dtype), wfft_ref[...],
                 preferred_element_type=jnp.float32) + bff_ref[...]  # (N, mlp)
    ff = tff_ref[...] * jnp.maximum(ff, 0.0)
    back = jnp.dot(ff.astype(wff_ref.dtype), wff_ref[...],
                   preferred_element_type=jnp.float32)               # (N, D)
    o_ref[...] = (xc - back).astype(o_ref.dtype)


def transformer_forward(x, params, *, heads, dim_head):
    """All `depth` layers in a single pallas_call; activations stay in VMEM."""
    B, N, D = x.shape
    depth, _, three_inner = params["wqkv_t"].shape
    inner = heads * dim_head
    assert three_inner == 3 * inner
    mlp = params["wff"].shape[1]

    kernel = functools.partial(transformer_kernel,
                               heads=heads, dim_head=dim_head,
                               cn_scale=D / (D - 1.0), radius=1.0)

    def wspec(shape):
        # Per-layer weight block, streamed along the depth ("arbitrary") axis.
        return pl.BlockSpec((None,) + shape,
                            lambda b, l, _s=shape: (l,) + (0,) * len(_s))

    grid_spec = pltpu.PrefetchScalarGridSpec(
        num_scalar_prefetch=0,
        grid=(B, depth),
        in_specs=[
            pl.BlockSpec((None, N, D), lambda b, l: (b, 0, 0)),  # x (batch-squeezed)
            wspec((D, 3 * inner)),                               # fused Wqkv^T
            wspec((inner, D)),                                   # Wo^T (to_out)
            wspec((1, D)),                                       # to_out bias
            wspec((D, mlp)),                                     # SLLRes W^T
            wspec((mlp, D)),                                     # SLLRes W
            wspec((1, mlp)),                                     # SLLRes bias
            wspec((1, mlp)),                                     # SLLRes T vector
        ],
        out_specs=pl.BlockSpec((None, N, D), lambda b, l: (b, 0, 0)),
        scratch_shapes=[pltpu.VMEM((N, inner), jnp.float32)],     # head outputs
    )
    return pl.pallas_call(
        kernel,
        out_shape=jax.ShapeDtypeStruct((B, N, D), x.dtype),
        grid_spec=grid_spec,
        compiler_params=pltpu.CompilerParams(
            dimension_semantics=("parallel", "arbitrary"),
            vmem_limit_bytes=32 * 1024 * 1024,
        ),
    )(x, params["wqkv_t"], params["wo_t"], params["bo"],
      params["wff_t"], params["wff"], params["bff"], params["tff"])


# ----------------------------------------------------------------------------
# Parameter setup (deterministic, mirrors the PyTorch __init__ shapes) — glue.
# The SDPLin/SLLRes rescalings are pure functions of the parameters (not of the
# data), matching eval-mode weight caching, so they are precomputed host-side.
# ----------------------------------------------------------------------------
def sdp_effective_weight(weight, q, gamma=1.0):
    """SDPLin: W = (weight @ diag(sqrt(T))).view(cout, cin)."""
    H, dh, cin = weight.shape
    q_ = q[:, :, None]                                        # (H, cin, 1)
    wT = jnp.swapaxes(weight, 1, 2)                           # (H, cin, dh)
    M = jnp.matmul(jnp.exp(-q_) * wT, weight) * jnp.exp(q_) / (gamma ** 2)
    T = 1.0 / jnp.sum(jnp.abs(M), axis=2)                     # (H, cin)
    W = weight * jnp.sqrt(T)[:, None, :]                      # scale columns
    return W.reshape(H * dh, cin)


def sllres_T(W, q):
    """SLLRes: T = 2 / |exp(-q) * W @ W.T * exp(q)|.sum(1)  (requires cout==cin)."""
    q_ = q[None, :]
    M = jnp.matmul(jnp.exp(-q_) * W, W.T) * jnp.exp(q_)
    return 2.0 / jnp.sum(jnp.abs(M), axis=1)


def init_sdp_lin(key, cin, cout, heads, bias):
    dim_head = cout // heads
    kw, kb, kq = jax.random.split(key, 3)
    fan_in, fan_out = dim_head * cin, heads * cin              # torch fan rules (3-D weight)
    std = (2.0 / (fan_in + fan_out)) ** 0.5                    # xavier_normal_
    weight = std * jax.random.normal(kw, (heads, dim_head, cin), jnp.float32)
    q = jax.random.uniform(kq, (heads, cin), jnp.float32)      # torch.rand
    b = None
    if bias:
        bound = 1.0 / (fan_in ** 0.5)
        b = jax.random.uniform(kb, (cout,), jnp.float32, minval=-bound, maxval=bound)
    return weight, q, b


def init_sllres(key, cin, cout):
    kw, kb, kq = jax.random.split(key, 3)
    std = (2.0 / (cin + cout)) ** 0.5                          # xavier_normal_
    W = std * jax.random.normal(kw, (cout, cin), jnp.float32)
    bound = 1.0 / (cin ** 0.5)
    b = jax.random.uniform(kb, (cout,), jnp.float32, minval=-bound, maxval=bound)
    q = jax.random.uniform(kq, (cout,), jnp.float32)
    return W, b, q


def make_transformer_params(key, dim, depth, heads, dim_head, mlp_dim,
                            mxu_dtype=MXU_DTYPE):
    inner = heads * dim_head
    wqkv_t, wo_t, bo, wff_t, wff, bff, tff = ([] for _ in range(7))
    for _ in range(depth):
        key, kq, kk, kv, ko, kf = jax.random.split(key, 6)
        wq_raw, qq, _ = init_sdp_lin(kq, dim, inner, heads, bias=False)
        wk_raw, qk, _ = init_sdp_lin(kk, dim, inner, heads, bias=False)
        wv_raw, qv, _ = init_sdp_lin(kv, dim, inner, heads, bias=False)
        wo_raw, qo, bo_l = init_sdp_lin(ko, inner, dim, 1, bias=True)
        w_ff, b_ff, q_ff = init_sllres(kf, dim, mlp_dim)

        wq = sdp_effective_weight(wq_raw, qq)                  # (inner, dim)
        wk = sdp_effective_weight(wk_raw, qk)
        wv = sdp_effective_weight(wv_raw, qv)
        wo = sdp_effective_weight(wo_raw, qo)                  # (dim, inner)

        # Fuse QKV and pre-transpose everything so the kernel never does .T.
        wqkv_t.append(jnp.concatenate([wq, wk, wv], axis=0).T)  # (dim, 3*inner)
        wo_t.append(wo.T)                                       # (inner, dim)
        bo.append(bo_l.reshape(1, dim))
        wff_t.append(w_ff.T)                                    # (dim, mlp)
        wff.append(w_ff)                                        # (mlp, dim)
        bff.append(b_ff.reshape(1, mlp_dim))
        tff.append(sllres_T(w_ff, q_ff).reshape(1, mlp_dim))

    return dict(
        wqkv_t=jnp.stack(wqkv_t).astype(mxu_dtype),
        wo_t=jnp.stack(wo_t).astype(mxu_dtype),
        bo=jnp.stack(bo),                                       # f32
        wff_t=jnp.stack(wff_t).astype(mxu_dtype),
        wff=jnp.stack(wff).astype(mxu_dtype),
        bff=jnp.stack(bff),                                     # f32
        tff=jnp.stack(tff),                                     # f32
    )


if __name__ == "__main__":
    # Small shapes consistent with the module's forward.
    B, N, D = 2, 8, 32            # batch, num_patches (seq), dim
    heads, dim_head = 4, 8        # inner_dim = 32
    mlp_dim = 32                  # must equal dim (see SLLRes broadcast note)
    depth = 2

    key = jax.random.PRNGKey(0)
    kx, kp = jax.random.split(key)
    x = jax.random.normal(kx, (B, N, D), jnp.float32)
    params = make_transformer_params(kp, D, depth, heads, dim_head, mlp_dim)

    out = transformer_forward(x, params, heads=heads, dim_head=dim_head)
    jax.block_until_ready(out)
    assert out.shape == (B, N, D) and out.dtype == jnp.float32
    assert bool(jnp.all(jnp.isfinite(out)))
    print("KERNEL_OK")
</pallas_src>

<mosaic_0001>
module attributes {stable_mosaic.version = 11 : i64} {
  func.func @transformer_kernel(%arg0: i32, %arg1: i32, %arg2: memref<1x8x32xf32, #tpu.memory_space<vmem>>, %arg3: memref<1x32x96xbf16, #tpu.memory_space<vmem>>, %arg4: memref<1x32x32xbf16, #tpu.memory_space<vmem>>, %arg5: memref<1x1x32xf32, #tpu.memory_space<vmem>>, %arg6: memref<1x32x32xbf16, #tpu.memory_space<vmem>>, %arg7: memref<1x32x32xbf16, #tpu.memory_space<vmem>>, %arg8: memref<1x1x32xf32, #tpu.memory_space<vmem>>, %arg9: memref<1x1x32xf32, #tpu.memory_space<vmem>>, %arg10: memref<1x8x32xf32, #tpu.memory_space<vmem>>, %arg11: memref<8x32xf32, #tpu.memory_space<vmem>>) attributes {dimension_semantics = [#tpu.dimension_semantics<parallel>, #tpu.dimension_semantics<arbitrary>], iteration_bounds = array<i64: 2, 2>, scalar_prefetch = 0 : i64, scratch_operands = 1 : i64, tpu.core_type = #tpu.core_type<tc>, window_params = [{transform_indices = @transform_0, window_bounds = array<i64: 1, 8, 32>}, {transform_indices = @transform_1, window_bounds = array<i64: 1, 32, 96>}, {transform_indices = @transform_2, window_bounds = array<i64: 1, 32, 32>}, {transform_indices = @transform_3, window_bounds = array<i64: 1, 1, 32>}, {transform_indices = @transform_4, window_bounds = array<i64: 1, 32, 32>}, {transform_indices = @transform_5, window_bounds = array<i64: 1, 32, 32>}, {transform_indices = @transform_6, window_bounds = array<i64: 1, 1, 32>}, {transform_indices = @transform_7, window_bounds = array<i64: 1, 1, 32>}, {transform_indices = @transform_8, window_bounds = array<i64: 1, 8, 32>}]} {
    %c0_i32 = arith.constant 0 : i32
    %0 = arith.cmpi eq, %arg1, %c0_i32 : i32
    %1 = arith.extui %0 : i1 to i32
    %c0_i32_0 = arith.constant 0 : i32
    %2 = arith.cmpi ne, %1, %c0_i32_0 : i32
    scf.if %2 {
      %c0_65 = arith.constant 0 : index
      %c0_66 = arith.constant 0 : index
      %c0_67 = arith.constant 0 : index
      %137 = vector.load %arg2[%c0_65, %c0_66, %c0_67] : memref<1x8x32xf32, #tpu.memory_space<vmem>>, vector<1x8x32xf32>
      %138 = vector.shape_cast %137 : vector<1x8x32xf32> to vector<8x32xf32>
      %c0_68 = arith.constant 0 : index
      %c0_69 = arith.constant 0 : index
      %c0_70 = arith.constant 0 : index
      %139 = vector.load %arg10[%c0_68, %c0_69, %c0_70] : memref<1x8x32xf32, #tpu.memory_space<vmem>>, vector<1x8x32xf32>
      %140 = vector.shape_cast %139 : vector<1x8x32xf32> to vector<8x32xf32>
      %141 = vector.shape_cast %138 : vector<8x32xf32> to vector<1x8x32xf32>
      tpu.vector_store %arg10[%c0_68, %c0_69, %c0_70], %141 {strides = array<i32>} : memref<1x8x32xf32, #tpu.memory_space<vmem>>, vector<1x8x32xf32>,
    } else {
    }
    %c0 = arith.constant 0 : index
    %c0_1 = arith.constant 0 : index
    %c0_2 = arith.constant 0 : index
    %3 = vector.load %arg10[%c0, %c0_1, %c0_2] : memref<1x8x32xf32, #tpu.memory_space<vmem>>, vector<1x8x32xf32>
    %4 = vector.shape_cast %3 : vector<1x8x32xf32> to vector<8x32xf32>
    %5 = arith.mulf %4, %4 : vector<8x32xf32>
    %6 = vector.shape_cast %5 : vector<8x32xf32> to vector<1x8x32xf32>
    %cst = arith.constant dense<0.000000e+00> : vector<1xf32>
    %7 = vector.multi_reduction <add>, %6, %cst [1, 2] : vector<1x8x32xf32> to vector<1xf32>
    %8 = vector.shape_cast %7 : vector<1xf32> to vector<1x1x1xf32>
    %9 = vector.extract %8[0, 0, 0] : f32 from vector<1x1x1xf32>
    %10 = vector.broadcast %9 : f32 to vector<1x1xf32>
    %11 = math.sqrt %10 : vector<1x1xf32>
    %cst_3 = arith.constant 9.99999996E-13 : f32
    %12 = vector.broadcast %cst_3 : f32 to vector<1x1xf32>
    %13 = arith.maximumf %11, %12 : vector<1x1xf32>
    %14 = tpu.reciprocal %13 {approx = true} : vector<1x1xf32> -> vector<1x1xf32>
    %cst_4 = arith.constant 1.000000e+00 : f32
    %15 = vector.broadcast %cst_4 : f32 to vector<1x1xf32>
    %16 = arith.cmpf olt, %11, %15 : vector<1x1xf32>
    %cst_5 = arith.constant 1.000000e+00 : f32
    %17 = vector.broadcast %cst_5 : f32 to vector<1x1xf32>
    %18 = arith.select %16, %17, %14 : vector<1x1xi1>, vector<1x1xf32>
    %19 = vector.broadcast %18 : vector<1x1xf32> to vector<8x32xf32>
    %20 = arith.mulf %4, %19 : vector<8x32xf32>
    %21 = arith.truncf %20 : vector<8x32xf32> to vector<8x32xbf16>
    %c0_6 = arith.constant 0 : index
    %c0_7 = arith.constant 0 : index
    %c0_8 = arith.constant 0 : index
    %22 = vector.load %arg3[%c0_6, %c0_7, %c0_8] : memref<1x32x96xbf16, #tpu.memory_space<vmem>>, vector<1x32x96xbf16>
    %23 = vector.shape_cast %22 : vector<1x32x96xbf16> to vector<32x96xbf16>
    %cst_9 = arith.constant dense<0.000000e+00> : vector<8x96xf32>
    %24 = tpu.matmul %21, %23, %cst_9 {dimension_numbers = #tpu.dot_dimension_numbers<[1], [0], [0], [1], [0, 0, 1, 1], [], []>} : vector<8x32xbf16>, vector<32x96xbf16>, vector<8x96xf32> -> vector<8x96xf32>
    %25 = vector.extract_strided_slice %24 {offsets = [0, 0], sizes = [8, 8], strides = [1, 1]} : vector<8x96xf32> to vector<8x8xf32>
    %26 = vector.extract_strided_slice %24 {offsets = [0, 32], sizes = [8, 8], strides = [1, 1]} : vector<8x96xf32> to vector<8x8xf32>
    %27 = vector.extract_strided_slice %24 {offsets = [0, 64], sizes = [8, 8], strides = [1, 1]} : vector<8x96xf32> to vector<8x8xf32>
    %cst_10 = arith.constant dense<0.000000e+00> : vector<8x8xf32>
    %28 = tpu.matmul %25, %26, %cst_10 {dimension_numbers = #tpu.dot_dimension_numbers<[1], [1], [0], [0], [0, 0, 1, 0], [], []>} : vector<8x8xf32>, vector<8x8xf32>, vector<8x8xf32> -> vector<8x8xf32>
    %cst_11 = arith.constant 0.353553385 : f32
    %29 = vector.broadcast %cst_11 : f32 to vector<8x8xf32>
    %30 = arith.mulf %28, %29 : vector<8x8xf32>
    %cst_12 = arith.constant dense<0xFF800000> : vector<8xf32>
    %31 = vector.multi_reduction <maximumf>, %30, %cst_12 [1] : vector<8x8xf32> to vector<8xf32>
    %32 = vector.shape_cast %31 : vector<8xf32> to vector<8x1xf32>
    %33 = vector.broadcast %32 : vector<8x1xf32> to vector<8x8xf32>
    %34 = arith.subf %30, %33 : vector<8x8xf32>
    %35 = math.exp %34 : vector<8x8xf32>
    %cst_13 = arith.constant dense<0.000000e+00> : vector<8xf32>
    %36 = vector.multi_reduction <add>, %35, %cst_13 [1] : vector<8x8xf32> to vector<8xf32>
    %37 = vector.shape_cast %36 : vector<8xf32> to vector<8x1xf32>
    %38 = tpu.reciprocal %37 {approx = true} : vector<8x1xf32> -> vector<8x1xf32>
    %39 = vector.broadcast %38 : vector<8x1xf32> to vector<8x8xf32>
    %40 = arith.mulf %35, %39 : vector<8x8xf32>
    %cst_14 = arith.constant dense<0.000000e+00> : vector<8x8xf32>
    %41 = tpu.matmul %40, %27, %cst_14 {dimension_numbers = #tpu.dot_dimension_numbers<[1], [0], [0], [1], [0, 0, 1, 1], [], []>} : vector<8x8xf32>, vector<8x8xf32>, vector<8x8xf32> -> vector<8x8xf32>
    %c0_15 = arith.constant 0 : index
    %c0_16 = arith.constant 0 : index
    %42 = vector.load %arg11[%c0_15, %c0_16] : memref<8x32xf32, #tpu.memory_space<vmem>>, vector<8x8xf32>
    tpu.vector_store %arg11[%c0_15, %c0_16], %41 {strides = array<i32>} : memref<8x32xf32, #tpu.memory_space<vmem>>, vector<8x8xf32>,
    %43 = vector.extract_strided_slice %24 {offsets = [0, 8], sizes = [8, 8], strides = [1, 1]} : vector<8x96xf32> to vector<8x8xf32>
    %44 = vector.extract_strided_slice %24 {offsets = [0, 40], sizes = [8, 8], strides = [1, 1]} : vector<8x96xf32> to vector<8x8xf32>
    %45 = vector.extract_strided_slice %24 {offsets = [0, 72], sizes = [8, 8], strides = [1, 1]} : vector<8x96xf32> to vector<8x8xf32>
    %cst_17 = arith.constant dense<0.000000e+00> : vector<8x8xf32>
    %46 = tpu.matmul %43, %44, %cst_17 {dimension_numbers = #tpu.dot_dimension_numbers<[1], [1], [0], [0], [0, 0, 1, 0], [], []>} : vector<8x8xf32>, vector<8x8xf32>, vector<8x8xf32> -> vector<8x8xf32>
    %cst_18 = arith.constant 0.353553385 : f32
    %47 = vector.broadcast %cst_18 : f32 to vector<8x8xf32>
    %48 = arith.mulf %46, %47 : vector<8x8xf32>
    %cst_19 = arith.constant dense<0xFF800000> : vector<8xf32>
    %49 = vector.multi_reduction <maximumf>, %48, %cst_19 [1] : vector<8x8xf32> to vector<8xf32>
    %50 = vector.shape_cast %49 : vector<8xf32> to vector<8x1xf32>
    %51 = vector.broadcast %50 : vector<8x1xf32> to vector<8x8xf32>
    %52 = arith.subf %48, %51 : vector<8x8xf32>
    %53 = math.exp %52 : vector<8x8xf32>
    %cst_20 = arith.constant dense<0.000000e+00> : vector<8xf32>
    %54 = vector.multi_reduction <add>, %53, %cst_20 [1] : vector<8x8xf32> to vector<8xf32>
    %55 = vector.shape_cast %54 : vector<8xf32> to vector<8x1xf32>
    %56 = tpu.reciprocal %55 {approx = true} : vector<8x1xf32> -> vector<8x1xf32>
    %57 = vector.broadcast %56 : vector<8x1xf32> to vector<8x8xf32>
    %58 = arith.mulf %53, %57 : vector<8x8xf32>
    %cst_21 = arith.constant dense<0.000000e+00> : vector<8x8xf32>
    %59 = tpu.matmul %58, %45, %cst_21 {dimension_numbers = #tpu.dot_dimension_numbers<[1], [0], [0], [1], [0, 0, 1, 1], [], []>} : vector<8x8xf32>, vector<8x8xf32>, vector<8x8xf32> -> vector<8x8xf32>
    %c0_22 = arith.constant 0 : index
    %c8 = arith.constant 8 : index
    %60 = vector.load %arg11[%c0_22, %c8] : memref<8x32xf32, #tpu.memory_space<vmem>>, vector<8x8xf32>
    tpu.vector_store %arg11[%c0_22, %c8], %59 {strides = array<i32>} : memref<8x32xf32, #tpu.memory_space<vmem>>, vector<8x8xf32>,
    %61 = vector.extract_strided_slice %24 {offsets = [0, 16], sizes = [8, 8], strides = [1, 1]} : vector<8x96xf32> to vector<8x8xf32>
    %62 = vector.extract_strided_slice %24 {offsets = [0, 48], sizes = [8, 8], strides = [1, 1]} : vector<8x96xf32> to vector<8x8xf32>
    %63 = vector.extract_strided_slice %24 {offsets = [0, 80], sizes = [8, 8], strides = [1, 1]} : vector<8x96xf32> to vector<8x8xf32>
    %cst_23 = arith.constant dense<0.000000e+00> : vector<8x8xf32>
    %64 = tpu.matmul %61, %62, %cst_23 {dimension_numbers = #tpu.dot_dimension_numbers<[1], [1], [0], [0], [0, 0, 1, 0], [], []>} : vector<8x8xf32>, vector<8x8xf32>, vector<8x8xf32> -> vector<8x8xf32>
    %cst_24 = arith.constant 0.353553385 : f32
    %65 = vector.broadcast %cst_24 : f32 to vector<8x8xf32>
    %66 = arith.mulf %64, %65 : vector<8x8xf32>
    %cst_25 = arith.constant dense<0xFF800000> : vector<8xf32>
    %67 = vector.multi_reduction <maximumf>, %66, %cst_25 [1] : vector<8x8xf32> to vector<8xf32>
    %68 = vector.shape_cast %67 : vector<8xf32> to vector<8x1xf32>
    %69 = vector.broadcast %68 : vector<8x1xf32> to vector<8x8xf32>
    %70 = arith.subf %66, %69 : vector<8x8xf32>
    %71 = math.exp %70 : vector<8x8xf32>
    %cst_26 = arith.constant dense<0.000000e+00> : vector<8xf32>
    %72 = vector.multi_reduction <add>, %71, %cst_26 [1] : vector<8x8xf32> to vector<8xf32>
    %73 = vector.shape_cast %72 : vector<8xf32> to vector<8x1xf32>
    %74 = tpu.reciprocal %73 {approx = true} : vector<8x1xf32> -> vector<8x1xf32>
    %75 = vector.broadcast %74 : vector<8x1xf32> to vector<8x8xf32>
    %76 = arith.mulf %71, %75 : vector<8x8xf32>
    %cst_27 = arith.constant dense<0.000000e+00> : vector<8x8xf32>
    %77 = tpu.matmul %76, %63, %cst_27 {dimension_numbers = #tpu.dot_dimension_numbers<[1], [0], [0], [1], [0, 0, 1, 1], [], []>} : vector<8x8xf32>, vector<8x8xf32>, vector<8x8xf32> -> vector<8x8xf32>
    %c0_28 = arith.constant 0 : index
    %c16 = arith.constant 16 : index
    %78 = vector.load %arg11[%c0_28, %c16] : memref<8x32xf32, #tpu.memory_space<vmem>>, vector<8x8xf32>
    tpu.vector_store %arg11[%c0_28, %c16], %77 {strides = array<i32>} : memref<8x32xf32, #tpu.memory_space<vmem>>, vector<8x8xf32>,
    %79 = vector.extract_strided_slice %24 {offsets = [0, 24], sizes = [8, 8], strides = [1, 1]} : vector<8x96xf32> to vector<8x8xf32>
    %80 = vector.extract_strided_slice %24 {offsets = [0, 56], sizes = [8, 8], strides = [1, 1]} : vector<8x96xf32> to vector<8x8xf32>
    %81 = vector.extract_strided_slice %24 {offsets = [0, 88], sizes = [8, 8], strides = [1, 1]} : vector<8x96xf32> to vector<8x8xf32>
    %cst_29 = arith.constant dense<0.000000e+00> : vector<8x8xf32>
    %82 = tpu.matmul %79, %80, %cst_29 {dimension_numbers = #tpu.dot_dimension_numbers<[1], [1], [0], [0], [0, 0, 1, 0], [], []>} : vector<8x8xf32>, vector<8x8xf32>, vector<8x8xf32> -> vector<8x8xf32>
    %cst_30 = arith.constant 0.353553385 : f32
    %83 = vector.broadcast %cst_30 : f32 to vector<8x8xf32>
    %84 = arith.mulf %82, %83 : vector<8x8xf32>
    %cst_31 = arith.constant dense<0xFF800000> : vector<8xf32>
    %85 = vector.multi_reduction <maximumf>, %84, %cst_31 [1] : vector<8x8xf32> to vector<8xf32>
    %86 = vector.shape_cast %85 : vector<8xf32> to vector<8x1xf32>
    %87 = vector.broadcast %86 : vector<8x1xf32> to vector<8x8xf32>
    %88 = arith.subf %84, %87 : vector<8x8xf32>
    %89 = math.exp %88 : vector<8x8xf32>
    %cst_32 = arith.constant dense<0.000000e+00> : vector<8xf32>
    %90 = vector.multi_reduction <add>, %89, %cst_32 [1] : vector<8x8xf32> to vector<8xf32>
    %91 = vector.shape_cast %90 : vector<8xf32> to vector<8x1xf32>
    %92 = tpu.reciprocal %91 {approx = true} : vector<8x1xf32> -> vector<8x1xf32>
    %93 = vector.broadcast %92 : vector<8x1xf32> to vector<8x8xf32>
    %94 = arith.mulf %89, %93 : vector<8x8xf32>
    %cst_33 = arith.constant dense<0.000000e+00> : vector<8x8xf32>
    %95 = tpu.matmul %94, %81, %cst_33 {dimension_numbers = #tpu.dot_dimension_numbers<[1], [0], [0], [1], [0, 0, 1, 1], [], []>} : vector<8x8xf32>, vector<8x8xf32>, vector<8x8xf32> -> vector<8x8xf32>
    %c0_34 = arith.constant 0 : index
    %c24 = arith.constant 24 : index
    %96 = vector.load %arg11[%c0_34, %c24] : memref<8x32xf32, #tpu.memory_space<vmem>>, vector<8x8xf32>
    tpu.vector_store %arg11[%c0_34, %c24], %95 {strides = array<i32>} : memref<8x32xf32, #tpu.memory_space<vmem>>, vector<8x8xf32>,
    %c0_35 = arith.constant 0 : index
    %c0_36 = arith.constant 0 : index
    %97 = vector.load %arg11[%c0_35, %c0_36] : memref<8x32xf32, #tpu.memory_space<vmem>>, vector<8x32xf32>
    %98 = arith.truncf %97 : vector<8x32xf32> to vector<8x32xbf16>
    %c0_37 = arith.constant 0 : index
    %c0_38 = arith.constant 0 : index
    %c0_39 = arith.constant 0 : index
    %99 = vector.load %arg4[%c0_37, %c0_38, %c0_39] : memref<1x32x32xbf16, #tpu.memory_space<vmem>>, vector<1x32x32xbf16>
    %100 = vector.shape_cast %99 : vector<1x32x32xbf16> to vector<32x32xbf16>
    %cst_40 = arith.constant dense<0.000000e+00> : vector<8x32xf32>
    %101 = tpu.matmul %98, %100, %cst_40 {dimension_numbers = #tpu.dot_dimension_numbers<[1], [0], [0], [1], [0, 0, 1, 1], [], []>} : vector<8x32xbf16>, vector<32x32xbf16>, vector<8x32xf32> -> vector<8x32xf32>
    %c0_41 = arith.constant 0 : index
    %c0_42 = arith.constant 0 : index
    %c0_43 = arith.constant 0 : index
    %102 = vector.load %arg5[%c0_41, %c0_42, %c0_43] : memref<1x1x32xf32, #tpu.memory_space<vmem>>, vector<1x1x32xf32>
    %103 = vector.shape_cast %102 : vector<1x1x32xf32> to vector<1x32xf32>
    %104 = vector.broadcast %103 : vector<1x32xf32> to vector<8x32xf32>
    %105 = arith.addf %101, %104 : vector<8x32xf32>
    %106 = arith.addf %105, %4 : vector<8x32xf32>
    %cst_44 = arith.constant dense<0.000000e+00> : vector<8xf32>
    %107 = vector.multi_reduction <add>, %106, %cst_44 [1] : vector<8x32xf32> to vector<8xf32>
    %108 = vector.shape_cast %107 : vector<8xf32> to vector<8x1xf32>
    %cst_45 = arith.constant 3.200000e+01 : f32
    %109 = vector.broadcast %cst_45 : f32 to vector<8x1xf32>
    %110 = arith.divf %108, %109 : vector<8x1xf32>
    %111 = vector.broadcast %110 : vector<8x1xf32> to vector<8x32xf32>
    %112 = arith.subf %106, %111 : vector<8x32xf32>
    %cst_46 = arith.constant 1.03225803 : f32
    %113 = vector.broadcast %cst_46 : f32 to vector<8x32xf32>
    %114 = arith.mulf %113, %112 : vector<8x32xf32>
    %115 = arith.truncf %114 : vector<8x32xf32> to vector<8x32xbf16>
    %c0_47 = arith.constant 0 : index
    %c0_48 = arith.constant 0 : index
    %c0_49 = arith.constant 0 : index
    %116 = vector.load %arg6[%c0_47, %c0_48, %c0_49] : memref<1x32x32xbf16, #tpu.memory_space<vmem>>, vector<1x32x32xbf16>
    %117 = vector.shape_cast %116 : vector<1x32x32xbf16> to vector<32x32xbf16>
    %cst_50 = arith.constant dense<0.000000e+00> : vector<8x32xf32>
    %118 = tpu.matmul %115, %117, %cst_50 {dimension_numbers = #tpu.dot_dimension_numbers<[1], [0], [0], [1], [0, 0, 1, 1], [], []>} : vector<8x32xbf16>, vector<32x32xbf16>, vector<8x32xf32> -> vector<8x32xf32>
    %c0_51 = arith.constant 0 : index
    %c0_52 = arith.constant 0 : index
    %c0_53 = arith.constant 0 : index
    %119 = vector.load %arg8[%c0_51, %c0_52, %c0_53] : memref<1x1x32xf32, #tpu.memory_space<vmem>>, vector<1x1x32xf32>
    %120 = vector.shape_cast %119 : vector<1x1x32xf32> to vector<1x32xf32>
    %121 = vector.broadcast %120 : vector<1x32xf32> to vector<8x32xf32>
    %122 = arith.addf %118, %121 : vector<8x32xf32>
    %c0_54 = arith.constant 0 : index
    %c0_55 = arith.constant 0 : index
    %c0_56 = arith.constant 0 : index
    %123 = vector.load %arg9[%c0_54, %c0_55, %c0_56] : memref<1x1x32xf32, #tpu.memory_space<vmem>>, vector<1x1x32xf32>
    %124 = vector.shape_cast %123 : vector<1x1x32xf32> to vector<1x32xf32>
    %cst_57 = arith.constant 0.000000e+00 : f32
    %125 = vector.broadcast %cst_57 : f32 to vector<8x32xf32>
    %126 = arith.maximumf %122, %125 : vector<8x32xf32>
    %127 = vector.broadcast %124 : vector<1x32xf32> to vector<8x32xf32>
    %128 = arith.mulf %127, %126 : vector<8x32xf32>
    %129 = arith.truncf %128 : vector<8x32xf32> to vector<8x32xbf16>
    %c0_58 = arith.constant 0 : index
    %c0_59 = arith.constant 0 : index
    %c0_60 = arith.constant 0 : index
    %130 = vector.load %arg7[%c0_58, %c0_59, %c0_60] : memref<1x32x32xbf16, #tpu.memory_space<vmem>>, vector<1x32x32xbf16>
    %131 = vector.shape_cast %130 : vector<1x32x32xbf16> to vector<32x32xbf16>
    %cst_61 = arith.constant dense<0.000000e+00> : vector<8x32xf32>
    %132 = tpu.matmul %129, %131, %cst_61 {dimension_numbers = #tpu.dot_dimension_numbers<[1], [0], [0], [1], [0, 0, 1, 1], [], []>} : vector<8x32xbf16>, vector<32x32xbf16>, vector<8x32xf32> -> vector<8x32xf32>
    %133 = arith.subf %114, %132 : vector<8x32xf32>
    %c0_62 = arith.constant 0 : index
    %c0_63 = arith.constant 0 : index
    %c0_64 = arith.constant 0 : index
    %134 = vector.load %arg10[%c0_62, %c0_63, %c0_64] : memref<1x8x32xf32, #tpu.memory_space<vmem>>, vector<1x8x32xf32>
    %135 = vector.shape_cast %134 : vector<1x8x32xf32> to vector<8x32xf32>
    %136 = vector.shape_cast %133 : vector<8x32xf32> to vector<1x8x32xf32>
    tpu.vector_store %arg10[%c0_62, %c0_63, %c0_64], %136 {strides = array<i32>} : memref<1x8x32xf32, #tpu.memory_space<vmem>>, vector<1x8x32xf32>,
    return
  }
  func.func @transform_0(%arg0: i32, %arg1: i32) -> (i32, i32, i32) {
    %c0_i32 = arith.constant 0 : i32
    %c0_i32_0 = arith.constant 0 : i32
    %c0_i32_1 = arith.constant 0 : i32
    return %arg0, %c0_i32, %c0_i32_0 : i32, i32, i32
  }
  func.func @transform_1(%arg0: i32, %arg1: i32) -> (i32, i32, i32) {
    %c0_i32 = arith.constant 0 : i32
    %c0_i32_0 = arith.constant 0 : i32
    %c0_i32_1 = arith.constant 0 : i32
    return %arg1, %c0_i32, %c0_i32_0 : i32, i32, i32
  }
  func.func @transform_2(%arg0: i32, %arg1: i32) -> (i32, i32, i32) {
    %c0_i32 = arith.constant 0 : i32
    %c0_i32_0 = arith.constant 0 : i32
    %c0_i32_1 = arith.constant 0 : i32
    return %arg1, %c0_i32, %c0_i32_0 : i32, i32, i32
  }
  func.func @transform_3(%arg0: i32, %arg1: i32) -> (i32, i32, i32) {
    %c0_i32 = arith.constant 0 : i32
    %c0_i32_0 = arith.constant 0 : i32
    %c0_i32_1 = arith.constant 0 : i32
    return %arg1, %c0_i32, %c0_i32_0 : i32, i32, i32
  }
  func.func @transform_4(%arg0: i32, %arg1: i32) -> (i32, i32, i32) {
    %c0_i32 = arith.constant 0 : i32
    %c0_i32_0 = arith.constant 0 : i32
    %c0_i32_1 = arith.constant 0 : i32
    return %arg1, %c0_i32, %c0_i32_0 : i32, i32, i32
  }
  func.func @transform_5(%arg0: i32, %arg1: i32) -> (i32, i32, i32) {
    %c0_i32 = arith.constant 0 : i32
    %c0_i32_0 = arith.constant 0 : i32
    %c0_i32_1 = arith.constant 0 : i32
    return %arg1, %c0_i32, %c0_i32_0 : i32, i32, i32
  }
  func.func @transform_6(%arg0: i32, %arg1: i32) -> (i32, i32, i32) {
    %c0_i32 = arith.constant 0 : i32
    %c0_i32_0 = arith.constant 0 : i32
    %c0_i32_1 = arith.constant 0 : i32
    return %arg1, %c0_i32, %c0_i32_0 : i32, i32, i32
  }
  func.func @transform_7(%arg0: i32, %arg1: i32) -> (i32, i32, i32) {
    %c0_i32 = arith.constant 0 : i32
    %c0_i32_0 = arith.constant 0 : i32
    %c0_i32_1 = arith.constant 0 : i32
    return %arg1, %c0_i32, %c0_i32_0 : i32, i32, i32
  }
  func.func @transform_8(%arg0: i32, %arg1: i32) -> (i32, i32, i32) {
    %c0_i32 = arith.constant 0 : i32
    %c0_i32_0 = arith.constant 0 : i32
    %c0_i32_1 = arith.constant 0 : i32
    return %arg0, %c0_i32, %c0_i32_0 : i32, i32, i32
  }
}

</mosaic_0001>

<bundles_post_ra>
// kernel: tpu_custom_call.1
= control target key start
LH: loop header
LB: loop body
LE: loop exit
PB: predicated region body
PF: predicated region fallthrough
CT: control target
= control target key end

     0   :  { %s2223_s0 = inlined_call_operand.hbm [shape: f32[2,8,32], index: 0, kind: input, shape index: {}]   ;;  %s2224_s1 = inlined_call_operand.hbm [shape: bf16[2,32,96], index: 1, kind: input, shape index: {}]   ;;  %s2225_s2 = inlined_call_operand.hbm [shape: bf16[2,32,32], index: 2, kind: input, shape index: {}]   ;;  %s2226_s3 = inlined_call_operand.vmem [shape: f32[2,1,32], index: 3, kind: input, shape index: {}]   ;;  %s2227_s4 = inlined_call_operand.hbm [shape: bf16[2,32,32], index: 4, kind: input, shape index: {}]   ;;  %s2228_s5 = inlined_call_operand.hbm [shape: bf16[2,32,32], index: 5, kind: input, shape index: {}]   ;;  %s2229_s6 = inlined_call_operand.vmem [shape: f32[2,1,32], index: 6, kind: input, shape index: {}]   ;;  %s2230_s7 = inlined_call_operand.vmem [shape: f32[2,1,32], index: 7, kind: input, shape index: {}]   ;;  %s2231_s8 = inlined_call_operand.hbm [shape: f32[2,8,32], index: 8, kind: output, shape index: {}]  }
   0x1   :  { %2247 = sst [smem:[#allocation29_spill]] %s2223_s0 }
   0x2   :  { %2248 = sst [smem:[#allocation30_spill]] %s2224_s1 }
   0x3   :  { %2249 = sst [smem:[#allocation31_spill]] %s2226_s3 }
   0x4   :  { %2250 = sst [smem:[#allocation32_spill]] %s2227_s4 }
   0x5   :  { %2251 = sst [smem:[#allocation33_spill]] %s2229_s6 }
   0x6   :  { %2252 = sst [smem:[#allocation34_spill]] %s2230_s7 }
   0x7   :  { %2253 = sst [smem:[#allocation35_spill]] %s2231_s8 }
   0x8   :  { %13 = vsyncpa [#allocation4], 0 }
   0x9   :  { %15 = vsyncpa [#allocation4 + $0x1], 0 }
   0xa   :  { %16 = vsyncpa [#allocation7], 0 }
   0xb   :  { %18 = vsyncpa [#allocation7 + $0x1], 0 }
   0xc   :  { %19 = vsyncpa [#allocation10], 0 }
   0xd   :  { %21 = vsyncpa [#allocation10 + $0x1], 0 }
   0xe   :  { %22 = vsyncpa [#allocation5], 0 }
   0xf   :  { %24 = vsyncpa [#allocation5 + $0x1], 0  ;;  %s1834_s27 = smov 0   ;;  %s1836_s28 = smov 0  }
  0x10   :  { %s1838_s29 = smov 0   ;;  %s1840_s30 = smov 0  }
  0x11   :  { %s1842_s9 = smov 0   ;;  %s1844_s10 = smov 0  }
  0x12   :  { %s1846_s11 = smov 0   ;;  %s1848_s12 = smov 0  }
  0x13   :  { %s1850_s13 = smov 0   ;;  %s1852_s14 = smov 0  }
  0x14   :  { %s1854_s15 = smov 0  }
  0x15 LB: > { %2254 = sst [smem:[#allocation17_spill]] %s1738_s29  ;;  %p57_p0 = scmp.eq.s32.totalorder %s1770_s15, 0  ;;  %s1770_s15 = sphi %s1854_s15, %s30_s15   ;;  %s1766_s14 = sphi %s1852_s14, %s2300_s14   ;;  %s1762_s13 = sphi %s1850_s13, %s2305_s13   ;;  %s1758_s12 = sphi %s1848_s12, %s2298_s12   ;;  %s1754_s11 = sphi %s1846_s11, %s2297_s11   ;;  %s1750_s10 = sphi %s1844_s10, %s2296_s10   ;;  %s1746_s9 = sphi %s1842_s9, %s2304_s9   ;;  %s1742_s30 = sphi %s1840_s30, %s2303_s30   ;;  %s1738_s29 = sphi %s1838_s29, %s2294_s29   ;;  %s1734_s28 = sphi %s1836_s28, %s2302_s28   ;;  %s1730_s27 = sphi %s1834_s27, %s2301_s27  }
  0x16   : > { %2255 = sst [smem:[#allocation18_spill]] %s1742_s30  ;;  %p82_p1 = scmp.ne.s32.totalorder %s1738_s29, %s1734_s28 }
  0x17   : > { %2256 = sst [smem:[#allocation19_spill]] %s1750_s10  ;;  %p2239_p2 = scmp.lt.s32.totalorder %s1770_s15, 4 }
  0x18   : > { %2257 = sst [smem:[#allocation20_spill]] %s1754_s11  ;;  %p84_p3 = por %p82_p1, %p57_p0 }
  0x19   : > { %2258 = sst [smem:[#allocation21_spill]] %s1758_s12  ;;  %s313_s18 = sand.u32 1, %s1770_s15  }
  0x1a   : > { %2259 = sst [smem:[#allocation22_spill]] %s1762_s13  ;;  %s315_s19 = sand.u32 1, %s1738_s29  }
  0x1b   : > { %2260 = sst [smem:[#allocation23_spill]] %s1766_s14  ;;  %s1899_s20 = sshll.u32 %s315_s19, 4 }
  0x1c   : > { %s1902_s21 = sshll.u32 %s1762_s13, 4  ;;  %s2261_s1 = sld [smem:[#allocation30_spill]] }
  0x1d   : > { %s317_s26 = scalar_lea.vmem [#allocation6], %s1899_s20  ;;  %p1911_p4 = pnand %p2239_p2, %p84_p3 }
  0x1e   : > { %s325_s17 = sshll.u32 %s317_s26, 4  ;;  %p1252_p5 = scmp.ge.s32.totalorder %s1770_s15, 1  ;;  %s326_s17 = int_to_ptr.vmem [resolvable:$true] %s325_s17 }
  0x1f   : > { %p417_p6 = scmp.lt.s32.totalorder %s1770_s15, 5  ;;  %s1917_s19 = scalar_lea.sflag [#allocation7], %s313_s18 }
  0x20   : > { %s2233_s22 = smov 64   ;;  %s2235_s23 = smov 4  }
  0x21   : > { %p1925_p7 = pnand %p1252_p5, %p417_p6  ;;  %s2264_s4 = sld [smem:[#allocation32_spill]] }
  0x22   : > { %s322_s24 = scalar_lea.hbm %s2261_s1, %s1902_s21  ;;  %s367_s7 = scalar_lea.vmem [#allocation9], %s1899_s20 }
  0x23   : > { %s323_s25 = sshll.u32 %s322_s24, 4  ;;  %s375_s6 = sshll.u32 %s367_s7, 4  ;;  %s324_s25 = int_to_ptr.hbm [resolvable:$true] %s323_s25  ;;  %s376_s6 = int_to_ptr.vmem [resolvable:$true] %s375_s6 }
  0x24   : > { %1344 = dma.hbm_to_vmem [thread:$0]  (!%p1911_p4), %s324_s25, 256, %s326_s17, %s1917_s19, %s2233_s22, %s2233_s22, %s2235_s23  }
  0x25   : > { %s1934_s17 = scalar_lea.sflag [#allocation10], %s313_s18  ;;  %s1943_s1 = sadd.s32 4294967295, %s1770_s15  }
  0x26   : > { %s2265_s7 = sadd.s32 1, %s1762_s13  ;;  %s42_s25 = sadd.s32 1, %s1766_s14 }
  0x27   : > { %s372_s8 = scalar_lea.hbm %s2264_s4, %s1902_s21  ;;  %p40_p8 = scmp.ge.s32.totalorder %s2265_s7, 2 }
  0x28   : > { %s373_s12 = sshll.u32 %s372_s8, 4  ;;  %s1235_s8 = sadd.s32 4294967294, %s1770_s15   ;;  %s374_s12 = int_to_ptr.hbm [resolvable:$true] %s373_s12 }
  0x29   : > { %1350 = dma.hbm_to_vmem [thread:$0]  (!%p1911_p4), %s374_s12, 256, %s376_s6, %s1934_s17, %s2233_s22, %s2233_s22, %s2235_s23  }
  0x2a   : > { %s49_s26 = sadd.s32 1, %s1750_s10  ;;  %p56_p9 = scmp.ne.s32.totalorder %s1750_s10, %s1746_s9 }
  0x2b   : > { %s2266_s18 = smov %s2265_s7  ;;  %s2309_s25 = smov (!%p40_p8, %s42_s25), %s1766_s14 }
  0x2c   : > { %s2307_s18 = smov (%p40_p8, %s2266_s18), 0  ;;  %p1962_p10 = por %p57_p0, %p56_p9 }
  0x2d   : > { %2267 = sst [smem:[#allocation24_spill]] %s2307_s18  ;;  %p62_p11 = scmp.ne.s32.totalorder %s1746_s9, %s1742_s30 }
  0x2e   : > { %p44_p12 = scmp.ge.s32.totalorder %s2309_s25, 2  ;;  %p63_p13 = scmp.eq.s32.totalorder %s1943_s1, 0 }
  0x2f   : > { %s72_s12 = ssub.s32 %s1762_s13, %s2307_s18  ;;  %p88_p1 = scmp.ne.s32.totalorder %s1734_s28, %s1730_s27 }
  0x30   : > { %s2311_s25 = smov (%p44_p12, %s2309_s25), 0  ;;  %p1978_p3 = por %p63_p13, %p62_p11 }
  0x31   : > { %2269 = sst [smem:[#allocation25_spill]] %s2311_s25  ;;  %p73_p0 = scmp.eq.s32.totalorder %s72_s12, 0 }
  0x32   : > { %s46_s22 = ssub.s32 %s1766_s14, %s2311_s25  ;;  %p1984_p5 = por %p88_p1, %p63_p13 }
  0x33   : > { %p47_p6 = scmp.eq.s32.totalorder %s46_s22, 0  ;;  %p268_p8 = scmp.eq.s32.totalorder %s1943_s1, 3 }
  0x34   : > { %s2272_s4 = sadd.s32 1, %s1738_s29  ;;  %p274_p2 = scmp.eq.s32.totalorder %s1235_s8, 3 }
  0x35   : > { %s1992_s27 = scalar_select %p73_p0, %s1738_s29, %s2272_s4  }
  0x36   : > { %s1995_s18 = scalar_select %p47_p6, %s1750_s10, %s49_s26  }
  0x37   : > { %2273 = sst [smem:[#allocation26_spill]] %s1992_s27  ;;  %p2000_p12 = por %p268_p8, %p56_p9 }
  0x38   : > { %2274 = sst [smem:[#allocation27_spill]] %s1995_s18  ;;  %s294_s12 = sand.u32 1, %s1750_s10  }
  0x39   : > { %s1239_s25 = sshll.u32 %s1766_s14, 3  ;;  %p2009_p13 = por %p274_p2, %p62_p11 }
  0x3a   : > { %s1238_s3 = sshll.u32 %s294_s12, 3  ;;  %s2278_s0 = sld [smem:[#allocation29_spill]] }
  0x3b   : > { %s2276_s22 = scalar_select %p2009_p13, 1, 0 }
  0x3c   : > { %s298_s8 = scalar_lea.vmem [#allocation3], %s1238_s3  ;;  %p2279_p9 = scmp.lt.s32.totalorder %s1770_s15, 4 }
  0x3d   : > { %2277 = sst [smem:[#allocation28_spill]] %s2276_s22  ;;  %s306_s10 = sshll.u32 %s298_s8, 4  ;;  %s307_s10 = int_to_ptr.vmem [resolvable:$true] %s306_s10 }
  0x3e   : > { %p1339_p2 = pnand %p2279_p9, %p1962_p10  ;;  %s344_s29 = scalar_lea.hbm %s2225_s2, %s1902_s21 }
  0x3f   : > { %s345_s11 = sshll.u32 %s344_s29, 4  ;;  %s295_s4 = scalar_lea.sflag [#allocation4], %s294_s12  ;;  %s346_s11 = int_to_ptr.hbm [resolvable:$true] %s345_s11 }
  0x40   : > { %s302_s26 = scalar_lea.hbm %s2278_s0, %s1239_s25  ;;  %s339_s25 = scalar_lea.vmem [#allocation8], %s1899_s20 }
  0x41   : > { %s304_s18 = sshll.u32 %s302_s26, 4  ;;  %s347_s26 = sshll.u32 %s339_s25, 4  ;;  %s305_s18 = int_to_ptr.hbm [resolvable:$true] %s304_s18  ;;  %s348_s26 = int_to_ptr.vmem [resolvable:$true] %s347_s26 }
  0x42   : > { %1341 = dma.hbm_to_vmem [thread:$0]  (!%p1339_p2), %s305_s18, 128, %s307_s10, %s295_s4  }
  0x43   : > { %s2280_s3 = smov 4   ;;  %s2281_s8 = smov 64  }
  0x44   : > { %1347 = dma.hbm_to_vmem [thread:$0]  (!%p1911_p4), %s346_s11, 256, %s348_s26, %s1917_s19, %s2281_s8, %s2281_s8, %s2280_s3  }
  0x45   : > { %s394_s22 = scalar_lea.hbm %s2228_s5, %s1902_s21  ;;  %s389_s14 = scalar_lea.vmem [#allocation11], %s1899_s20 }
  0x46   : > { %s397_s27 = sshll.u32 %s389_s14, 4  ;;  %s395_s30 = sshll.u32 %s394_s22, 4  ;;  %s398_s27 = int_to_ptr.vmem [resolvable:$true] %s397_s27  ;;  %s396_s30 = int_to_ptr.hbm [resolvable:$true] %s395_s30 }
  0x47   : > { %1353 = dma.hbm_to_vmem [thread:$0]  (!%p1911_p4), %s396_s30, 256, %s398_s27, %s1934_s17, %s2281_s8, %s2281_s8, %s2280_s3  }
  0x48   : > { %421 = sbr.rel (%p1925_p7) target bundleno = 2172 (0x87c), region = 52  ;;  %s2045_s29 = sand.u32 (!%p1925_p7), 1, %s1746_s9  }
  0x49   : > { %s1253_s0 = sshll.u32 (!%p1925_p7), %s2045_s29, 3  ;;  %s424_s10 = scalar_lea.sflag (!%p1925_p7), [#allocation4], %s2045_s29 }
  0x4a   : > { %s427_s20 = scalar_lea.vmem (!%p1925_p7), [#allocation3], %s1253_s0 }
  0x4d   : > { %1713 = dma.done.wait (%p1978_p3), %s424_s10, 128  }
  0x4e   : > { %1715 = vsyncadd (%p1978_p3), %s424_s10, 4294967168  ;;  %s433_s30 = sand.u32 1, %s1943_s1   ;;  %s435_s16 = sand.u32 1, %s1734_s28  }
  0x4f   : > { %s2055_s21 = sshll.u32 %s435_s16, 4  ;;  %s434_s19 = scalar_lea.sflag [#allocation7], %s433_s30 }
  0x50   : > { %s437_s24 = scalar_lea.vmem [#allocation6], %s2055_s21 }
  0x51   : > { %1717 = dma.done.wait (%p1984_p5), %s434_s19, 512  }
  0x52   : > { %1719 = vsyncadd (%p1984_p5), %s434_s19, 4294966784  ;;  %s447_s17 = scalar_lea.vmem [#allocation8], %s2055_s21  ;;  %s454_s18 = scalar_lea.sflag [#allocation10], %s433_s30 }
  0x53   : > { %s457_s7 = scalar_lea.vmem [#allocation9], %s2055_s21 }
  0x54   : > { %1721 = dma.done.wait (%p1984_p5), %s454_s18, 512  }
  0x55   : > { %1723 = vsyncadd (%p1984_p5), %s454_s18, 4294966784  ;;  %s2282_s1 = sld [smem:[#allocation20_spill]]  ;;  %s467_s30 = scalar_lea.vmem [#allocation11], %s2055_s21 }
  0x56   : > { %s2283_s4 = sld [smem:[#allocation31_spill]]  ;;  %s2085_s16 = scalar_lea.vmem [#allocation12], %s1253_s0 }
  0x57   : > { %s2284_s8 = sld [smem:[#allocation33_spill]] }
  0x58   : > { %s2285_s27 = sld [smem:[#allocation34_spill]] }
  0x5b   : > { %p530_p4 = scmp.lt.s32.totalorder %s2282_s1, 1  ;;  %p1259_p7 = scmp.ne.s32.totalorder %s2282_s1, 0 }
  0x5d   : > { %s2070_s12 = scalar_select %p530_p4, %s2282_s1, 1 }
  0x5e   : > { %543 = sbr.rel (%p1259_p7) target bundleno = 101 (0x65), region = 76 }
  0x5f   : > { %s532_s25 = scalar_lea.vmem %s2283_s4, %s2070_s12  ;;  %s535_s6 = scalar_lea.vmem %s2284_s8, %s2070_s12 }
  0x60   : > { %s538_s10 = scalar_lea.vmem %s2285_s27, %s2070_s12 }
  0x63   : > { %v544_v0 = vld [vmem:[%s427_s20] sm:$0xff]  ;;  %vm545_vm0 = vcmask 261120  }
  0x64   : > { %546 = vst.msk [vmem:[%s2085_s16] sm:$0xff] %vm545_vm0, %v544_v0 }
  0x65 PF: > { %vm549_vm1 = vcmask 261120   ;;  %v1317_v11 = vld [vmem:[%s437_s24 + $0x8] sm:$0xff]  ;;  %v1316_v12 = vld [vmem:[%s437_s24] sm:$0xff]  ;;  %s1774_s20 = smov 120   ;;  %s1775_s19 = smov 88   ;;  %vm614_vm5 = vcmask 64512  }
  0x66   : > { %604 = vmatpush.bf16.msra.mxu0 %v1317_v11  ;;  %s1776_s24 = smov 96   ;;  %s1777_s18 = smov 56   ;;  %vm748_vm6 = vcmask 130112   ;;  %vm820_vm7 = vcmask 195712   ;;  %vm892_vm8 = vcmask 261312  }
  0x67   : > { %s1778_s1 = smov 80   ;;  %s1779_s22 = smov 72  }
  0x68   : > { %s1780_s11 = smov 104   ;;  %s1781_s4 = smov 64  }
  0x69   : > { %s1782_s26 = smov 112   ;;  %s1783_s3 = smov 40  }
  0x6a   : > { %605 = vmatpush.bf16.msra.mxu0 %v1316_v12  ;;  %s1784_s8 = smov 48   ;;  %s1785_s14 = smov 8  }
  0x6b   : > { %v2090_v1 = vld [vmem:[%s2085_s16] sm:$0xff]  ;;  %s1786_s23 = smov 24   ;;  %s1787_s27 = smov 16  }
  0x6c   : > { %v548_v2 = vmul.f32 %v2090_v1, %v2090_v1  ;;  %s1025_s12 = scalar_lea.sflag [#allocation5], %s2045_s29 }
  0x6e   : > { %v550_v3 = vsel %vm549_vm1, %v548_v2, 0.0 }
  0x6f   : > { %551 = vadd.xlane.f32.xlu0 %v550_v3 }
  0xe2   : > { %v552_v4 = vpop.xlane.xlu0 %551 }
  0xe3   : > { %v553_v5 = vrot.slane %v552_v4, 4 }
  0xe5   : > { %v554_v6 = vadd.f32 %v553_v5, %v552_v4 }
  0xe7   : > { %v555_v7 = vrot.slane %v554_v6, 2 }
  0xe9   : > { %v556_v8 = vadd.f32 %v555_v7, %v554_v6 }
  0xeb   : > { %v557_v9 = vrot.slane %v556_v8, 1 }
  0xed   : > { %v558_v10 = vadd.f32 %v557_v9, %v556_v8 }
  0xef   : > { %1324 = vpush %v558_v10 }
 0x120   : > { %s1325_s0 = spop %1324 }
 0x121   : > { %v560_v13 = vstv %s1325_s0 }
 0x122   : > { %1468 = vrsqrt.f32 %v560_v13  ;;  %vm568_vm2 = vcmp.eq.f32.partialorder %v560_v13, inf  ;;  %v571_v21 = vand.u32 2147483648, %v560_v13  ;;  %vm570_vm3 = vcmp.eq.f32.partialorder %v560_v13, 0.0 }
 0x128   : > { %v1469_v14 = vpop.eup %1468 }
 0x129   : > { %v562_v15 = vmul.f32 %v1469_v14, %v560_v13 }
 0x12b   : > { %v563_v16 = vmul.f32 %v1469_v14, %v562_v15 }
 0x12d   : > { %v564_v17 = vmul.f32 0.5, %v563_v16 }
 0x12f   : > { %v565_v18 = vsub.f32 1.5, %v564_v17 }
 0x131   : > { %v566_v19 = vmul.f32 %v1469_v14, %v565_v18 }
 0x133   : > { %v567_v20 = vmul.f32 %v566_v19, %v560_v13 }
 0x135   : > { %v569_v22 = vsel %vm568_vm2, %v560_v13, %v567_v20 }
 0x136   : > { %v572_v23 = vsel %vm570_vm3, %v571_v21, %v569_v22 }
 0x137   : > { %v573_v24 = vmax.f32 %v572_v23, 1e-12  ;;  %vm575_vm4 = vcmp.lt.f32.partialorder %v572_v23, 1.0 }
 0x139   : > { %1470 = vrcp.f32 %v573_v24 }
 0x13f   : > { %v1471_v25 = vpop.eup %1470 }
 0x140   : > { %v576_v26 = vsel %vm575_vm4, 1.0, %v1471_v25 }
 0x141   : > { %v577_v27 = vmul.f32 %v576_v26, %v2090_v1 }
 0x143   : > { %v578_v28 = vpack.c.bf16 %v577_v27, %v577_v27 }
 0x145   : > { %1268 = vmatmul.msk.bf16.vlgmr.msra.gmra.mxu0 %vm549_vm1, %v578_v28  ;;  %v1319_v28 = vld [vmem:[%s447_s17 + $0x8] sm:$0xff] }
 0x1c2   : > { %v2101_v29 = vpop.f32.mrf.mxu0 }
 0x1c3   : > { %678 = vrot.lane.b32.xlu1 %v2101_v29, %s1774_s20  ;;  %680 = vrot.lane.b32.xlu0 %v2101_v29, %s1775_s19 }
 0x1ca   : > { %v609_v30 = vpop.f32.mrf.mxu0 }
 0x1cb   : > { %612 = vrot.lane.b32.xlu1 %v2101_v29, %s1776_s24  ;;  %718 = vrot.lane.b32.xlu0 %v2101_v29, %s1777_s18 }
 0x1d3   : > { %752 = vrot.lane.b32.xlu0 %v2101_v29, %s1778_s1 }
 0x1db   : > { %824 = vrot.lane.b32.xlu0 %v2101_v29, %s1779_s22 }
 0x1e3   : > { %822 = vrot.lane.b32.xlu0 %v2101_v29, %s1780_s11 }
 0x235   : > { %v679_v31 = vpop.permute.xlu1 %678  ;;  %v681_v32 = vpop.permute.xlu0 %680 }
 0x236   : > { %1272 = vmatpush.xpose.msk.msra.mxu3 %vm614_vm5, %v681_v32 }
 0x239   : > { %1273 = vmatmul.msk.f32.vlgmr.msra.gmra.mxu3 %vm614_vm5, %v679_v31 }
 0x23d   : > { %v613_v33 = vpop.permute.xlu1 %612  ;;  %v719_v34 = vpop.permute.xlu0 %718 }
 0x23e   : > { %1269 = vmatpush.xpose.msk.msra.mxu1 %vm614_vm5, %v613_v33  ;;  %739 = vmatpush.msra.mxu2 %v719_v34  ;;  %v1321_v34 = vld [vmem:[%s457_s7 + $0x8] sm:$0xff] }
 0x23f   : > { %976 = vmatpush.bf16.msrb.mxu0 %v1321_v34 }
 0x241   : > { %1270 = vmatmul.msk.f32.vlgmr.msra.gmra.mxu1 %vm614_vm5, %v2101_v29 }
 0x245   : > { %v753_v35 = vpop.permute.xlu0 %752 }
 0x24d   : > { %v825_v36 = vpop.permute.xlu0 %824 }
 0x24e   : > { %1278 = vmatpush.xpose.msk.msrb.mxu2 %vm614_vm5, %v825_v36 }
 0x255   : > { %v823_v61 = vpop.permute.xlu0 %822 }
 0x2bc   : > { %v703_v40 = vpop.f32.mrf.mxu3 }
 0x2bd   : > { %v706_v41 = vmul.f32 0.35355338, %v703_v40 }
 0x2be   : > { %v636_v37 = vpop.f32.mrf.mxu1 }
 0x2bf   : > { %v639_v38 = vmul.f32 0.35355338, %v636_v37  ;;  %v707_v42 = vsel %vm614_vm5, %v706_v41, -inf }
 0x2c1   : > { %v640_v39 = vsel %vm614_vm5, %v639_v38, -inf }
 0x2c2   : > { %641 = vmax.xlane.f32.xlu2 %v640_v39 }
 0x2ca   : > { %708 = vmax.xlane.f32.xlu2 %v707_v42  ;;  %v1788_v42 = vmov 32.0  }
 0x2e2   : > { %651 = vrot.lane.b32.xlu2 %v2101_v29, %s1781_s4 }
 0x335   : > { %v642_v43 = vpop.xlane.xlu2 %641 }
 0x336   : > { %v643_v44 = vsub.f32 %v639_v38, %v642_v43 }
 0x338   : > { %v644_v45 = vmul.f32 1.442695, %v643_v44 }
 0x33a   : > { %1472 = vpow2.f32 %v644_v45 }
 0x33d   : > { %v709_v46 = vpop.xlane.xlu2 %708 }
 0x33e   : > { %v710_v47 = vsub.f32 %v706_v41, %v709_v46  ;;  %v1320_v41 = vld [vmem:[%s457_s7] sm:$0xff] }
 0x33f   : > { %977 = vmatpush.bf16.msrb.mxu0 %v1320_v41 }
 0x340   : > { %v1473_v48 = vpop.eup %1472  ;;  %v711_v49 = vmul.f32 1.442695, %v710_v47 }
 0x341   : > { %v646_v50 = vsel %vm614_vm5, %v1473_v48, 0.0 }
 0x342   : > { %1474 = vpow2.f32 %v711_v49  ;;  %647 = vadd.xlane.f32.xlu1 %v646_v50 }
 0x345   : > { %v652_v51 = vpop.permute.xlu2 %651 }
 0x346   : > { %672 = vmatpush.msrb.mxu1 %v652_v51 }
 0x348   : > { %1275 = vmatpush.xpose.msk.msra.mxu1 %vm614_vm5, %v753_v35  ;;  %v1475_v52 = vpop.eup %1474  ;;  %v1465_v35 = vld [vmem:[%s532_s25] ss:$0 sm:$0xff] }
 0x349   : > { %v713_v53 = vsel %vm614_vm5, %v1475_v52, 0.0 }
 0x34a   : > { %714 = vadd.xlane.f32.xlu2 %v713_v53  ;;  %v1323_v53 = vld [vmem:[%s467_s30 + $0x8] sm:$0xff] }
 0x362   : > { %750 = vrot.lane.b32.xlu2 %v2101_v29, %s1782_s26  ;;  %s1037_s26 = sshll.u32 %s2085_s16, 4  ;;  %s1038_s26 = int_to_ptr.vmem [resolvable:$true] %s1037_s26 }
 0x3b5   : > { %v648_v54 = vpop.xlane.xlu1 %647 }
 0x3b6   : > { %1476 = vrcp.f32 %v648_v54  ;;  %v1322_v54 = vld [vmem:[%s467_s30] sm:$0xff] }
 0x3bc   : > { %v1477_v55 = vpop.eup %1476 }
 0x3bd   : > { %v715_v56 = vpop.xlane.xlu2 %714  ;;  %v650_v57 = vmul.f32 %v1477_v55, %v1473_v48  ;;  %v1466_v55 = vld [vmem:[%s535_s6] ss:$0 sm:$0xff]  ;;  %s2290_s6 = sld [smem:[#allocation35_spill]] }
 0x3be   : > { %1478 = vrcp.f32 %v715_v56 }
 0x3bf   : > { %1271 = vmatmul.msk.f32.vlgmr.msrb.gmra.mxu1 %vm614_vm5, %v650_v57 }
 0x3c4   : > { %v1479_v58 = vpop.eup %1478 }
 0x3c5   : > { %v751_v59 = vpop.permute.xlu2 %750  ;;  %v717_v60 = vmul.f32 %v1479_v58, %v1475_v52  ;;  %v1467_v58 = vld [vmem:[%s538_s10] ss:$0 sm:$0xff] }
 0x3c7   : > { %1274 = vmatmul.msk.f32.vlgmr.msra.gmra.mxu2 %vm614_vm5, %v717_v60  ;;  %1276 = vmatmul.msk.f32.vlgmr.msra.gmra.mxu1 %vm614_vm5, %v751_v59 }
 0x3c8   : > { %1015 = vmatpush.bf16.msra.mxu2 %v1323_v53 }
 0x3cc   : > { %1016 = vmatpush.bf16.msra.mxu2 %v1322_v54 }
 0x3cf   : > { %1279 = vmatmul.msk.f32.vlgmr.msrb.gmra.mxu2 %vm614_vm5, %v823_v61 }
 0x43c   : > { %v674_v62 = vpop.f32.mrf.mxu1 }
 0x43d   : > { %677 = vst.msk [vmem:[#allocation2] sm:$0xff] %vm614_vm5, %v674_v62 }
 0x444   : > { %v775_v63 = vpop.f32.mrf.mxu1 }
 0x445   : > { %v778_v0 = vmul.f32 0.35355338, %v775_v63 }
 0x447   : > { %v779_v2 = vsel %vm614_vm5, %v778_v0, -inf }
 0x448   : > { %780 = vmax.xlane.f32.xlu2 %v779_v2 }
 0x44a   : > { %v741_v3 = vpop.f32.mrf.mxu2 }
 0x452   : > { %v847_v4 = vpop.f32.mrf.mxu2 }
 0x453   : > { %v850_v5 = vmul.f32 0.35355338, %v847_v4 }
 0x455   : > { %v851_v6 = vsel %vm614_vm5, %v850_v5, -inf }
 0x456   : > { %852 = vmax.xlane.f32.xlu1 %v851_v6 }
 0x460   : > { %862 = vrot.lane.b32.xlu2 %v2101_v29, %s1783_s3 }
 0x4bb   : > { %v781_v7 = vpop.xlane.xlu2 %780 }
 0x4bc   : > { %v782_v8 = vsub.f32 %v778_v0, %v781_v7 }
 0x4be   : > { %v783_v9 = vmul.f32 1.442695, %v782_v8 }
 0x4c0   : > { %1480 = vpow2.f32 %v783_v9 }
 0x4c3   : > { %v863_v10 = vpop.permute.xlu2 %862 }
 0x4c4   : > { %883 = vmatpush.msrb.mxu1 %v863_v10 }
 0x4c6   : > { %v1481_v11 = vpop.eup %1480 }
 0x4c7   : > { %v785_v12 = vsel %vm614_vm5, %v1481_v11, 0.0 }
 0x4c8   : > { %786 = vadd.xlane.f32.xlu0 %v785_v12 }
 0x4c9   : > { %v853_v13 = vpop.xlane.xlu1 %852 }
 0x4ca   : > { %v854_v14 = vsub.f32 %v850_v5, %v853_v13 }
 0x4cc   : > { %v855_v15 = vmul.f32 1.442695, %v854_v14 }
 0x4ce   : > { %1482 = vpow2.f32 %v855_v15 }
 0x4d4   : > { %v1483_v16 = vpop.eup %1482 }
 0x4d5   : > { %v857_v17 = vsel %vm614_vm5, %v1483_v16, 0.0 }
 0x4d6   : > { %858 = vadd.xlane.f32.xlu1 %v857_v17 }
 0x4ef   : > { %790 = vrot.lane.b32.xlu1 %v2101_v29, %s1784_s8  ;;  %v1318_v29 = vld [vmem:[%s447_s17] sm:$0xff]  ;;  %s2287_s17 = sld [smem:[#allocation21_spill]] }
 0x4f5   : > { %s1309_s21 = sshll.u32 %s2287_s17, 3 }
 0x4f6   : > { %s1035_s4 = scalar_lea.hbm %s2290_s6, %s1309_s21 }
 0x4f7   : > { %745 = vrot.lane.b32.xlu1 %v741_v3, %s1785_s14  ;;  %s1039_s3 = sshll.u32 %s1035_s4, 4  ;;  %s1040_s3 = int_to_ptr.hbm [resolvable:$true] %s1039_s3 }
 0x4f8   : > { %s1654_s10 = sshra.s32 %s1040_s3, 4  ;;  %s1655_s10 = int_to_ptr.hbm [resolvable:$true] %s1654_s10 }
 0x4f9   : > { %s1656_s8 = scalar_lea.hbm %s1655_s10, 8  ;;  %p1661_p3 = scmp.lt.s32.totalorder %s1655_s10, %s2290_s6 }
 0x4fa   : > { %p1657_p10 = scmp.ne.s32.totalorder %s1655_s10, %s1656_s8 }
 0x4fc   : > { %p1658_p11 = pnand %p1657_p10, %p2000_p12 }
 0x4fe   : > { %p1659_p1 = pneg %p1658_p11 }
 0x53b   : > { %v787_v21 = vpop.xlane.xlu0 %786 }
 0x549   : > { %v859_v18 = vpop.xlane.xlu1 %858 }
 0x54a   : > { %1484 = vrcp.f32 %v859_v18 }
 0x54b   : > { %1486 = vrcp.f32 %v787_v21 }
 0x54c   : > { %1488 = vrcp.f32 %v1788_v42 }
 0x550   : > { %v1485_v19 = vpop.eup %1484 }
 0x551   : > { %v861_v20 = vmul.f32 %v1485_v19, %v1483_v16  ;;  %v1487_v22 = vpop.eup %1486 }
 0x552   : > { %v789_v24 = vmul.f32 %v1487_v22, %v1481_v11  ;;  %v1489_v43 = vpop.eup %1488 }
 0x553   : > { %1280 = vmatmul.msk.f32.vlgmr.msrb.gmra.mxu1 %vm614_vm5, %v861_v20  ;;  %v937_v44 = vmul.f32 32.0, %v1489_v43  ;;  %vm941_vm9 = vweird.f32 %v1489_v43 }
 0x555   : > { %v938_v45 = vsub.f32 1.0, %v937_v44 }
 0x557   : > { %v939_v46 = vmul.f32 %v1489_v43, %v938_v45 }
 0x559   : > { %v940_v47 = vadd.f32 %v1489_v43, %v939_v46 }
 0x561   : > { %v791_v23 = vpop.permute.xlu1 %790 }
 0x562   : > { %811 = vmatpush.msrb.mxu3 %v791_v23 }
 0x563   : > { %1277 = vmatmul.msk.f32.vlgmr.msrb.gmra.mxu3 %vm614_vm5, %v789_v24 }
 0x564   : > { %925 = vmatpush.bf16.msra.mxu3 %v1319_v28 }
 0x568   : > { %926 = vmatpush.bf16.msra.mxu3 %v1318_v29 }
 0x569   : > { %v746_v25 = vpop.permute.xlu1 %745 }
 0x56a   : > { %749 = vst.msk [vmem:[#allocation2] sm:$0xff] %vm748_vm6, %v746_v25 }
 0x5d0   : > { %v885_v26 = vpop.f32.mrf.mxu1 }
 0x5d1   : > { %889 = vrot.lane.b32.xlu1 %v885_v26, %s1786_s23 }
 0x5e6   : > { %v813_v27 = vpop.f32.mrf.mxu3 }
 0x5e7   : > { %817 = vrot.lane.b32.xlu0 %v813_v27, %s1787_s27  ;;  %s1660_s27 = scalar_lea.hbm %s2290_s6, 16 }
 0x5e8   : > { %p1662_p0 = scmp.lt.s32.totalorder %s1660_s27, %s1656_s8 }
 0x5ea   : > { %p1663_p5 = por %p1662_p0, %p1661_p3 }
 0x5ec   : > { %p1664_p6 = pnand %p1663_p5, %p1659_p1 }
 0x643   : > { %v890_v31 = vpop.permute.xlu1 %889 }
 0x659   : > { %v818_v30 = vpop.permute.xlu0 %817 }
 0x65a   : > { %821 = vst.msk [vmem:[#allocation2] sm:$0xff] %vm820_vm7, %v818_v30 }
 0x65b   : > { %893 = vst.msk [vmem:[#allocation2] sm:$0xff] %vm892_vm8, %v890_v31 }
 0x662   : > { %v894_v32 = vld [vmem:[#allocation2] sm:$0xff] }
 0x663   : > { %v895_v33 = vpack.c.bf16 %v894_v32, %v894_v32 }
 0x665   : > { %1289 = vmatmul.msk.bf16.vlgmr.msra.gmra.mxu3 %vm549_vm1, %v895_v33 }
 0x6e8   : > { %v928_v36 = vpop.f32.mrf.mxu3 }
 0x6e9   : > { %v929_v37 = vadd.f32 %v1465_v35, %v928_v36 }
 0x6eb   : > { %v932_v38 = vadd.f32 %v929_v37, %v2090_v1  ;;  %v942_v1 = vsel %vm941_vm9, %v1489_v43, %v940_v47 }
 0x6ed   : > { %v933_v39 = vsel %vm549_vm1, %v932_v38, 0.0 }
 0x6ee   : > { %934 = vadd.xlane.f32.xlu1 %v933_v39 }
 0x6f0   : > { %v930_v40 = vpop.f32.mrf.mxu3 }
 0x761   : > { %v935_v48 = vpop.xlane.xlu1 %934 }
 0x762   : > { %v943_v49 = vmul.f32 %v942_v1, %v935_v48 }
 0x764   : > { %v944_v50 = vsub.f32 %v932_v38, %v943_v49 }
 0x766   : > { %v945_v51 = vmul.f32 1.032258, %v944_v50 }
 0x768   : > { %v946_v52 = vpack.c.bf16 %v945_v51, %v945_v51 }
 0x76a   : > { %1298 = vmatmul.msk.bf16.vlgmr.msrb.gmra.mxu0 %vm549_vm1, %v946_v52 }
 0x7e7   : > { %v979_v56 = vpop.f32.mrf.mxu0 }
 0x7e8   : > { %v980_v57 = vadd.f32 %v1466_v55, %v979_v56 }
 0x7ea   : > { %v984_v59 = vmax.f32 %v980_v57, 0.0 }
 0x7ec   : > { %v988_v60 = vmul.f32 %v1467_v58, %v984_v59 }
 0x7ee   : > { %v989_v61 = vpack.c.bf16 %v988_v60, %v988_v60 }
 0x7ef   : > { %v981_v62 = vpop.f32.mrf.mxu0 }
 0x7f0   : > { %1307 = vmatmul.msk.bf16.vlgmr.msra.gmra.mxu2 %vm549_vm1, %v989_v61 }
 0x873   : > { %v1018_v63 = vpop.f32.mrf.mxu2 }
 0x874   : > { %v1022_v0 = vsub.f32 %v945_v51, %v1018_v63 }
 0x876   : > { %1023 = vst.msk [vmem:[%s2085_s16] sm:$0xff] %vm549_vm1, %v1022_v0 }
 0x877   : > { %1667 = shalt.err (!%p1664_p6)
}
 0x878   : > { %1336 = dma.vmem_to_hbm [thread:$0]  (%p2000_p12), %s1038_s26, 128, %s1040_s3, %s1025_s12  }
 0x87b   : > { %v1020_v2 = vpop.f32.mrf.mxu2 }
 0x87c PF: > { %s2291_s29 = sld [smem:[#allocation18_spill]]  ;;  %p1359_p8 = scmp.ge.s32.totalorder %s1770_s15, 2 }
 0x87e   : > { %p1355_p9 = pnand %p1359_p8, %p2009_p13 }
 0x880   : > { %p1356_p2 = pneg %p1355_p9 }
 0x882   : > { %s1051_s19 = sand.u32 1, %s2291_s29  }
 0x883   : > { %s1052_s17 = scalar_lea.sflag [#allocation5], %s1051_s19 }
 0x884   : > { %1725 = dma.done.wait (%p1356_p2), %s1052_s17, 128  }
 0x885   : > { %1727 = vsyncadd (%p1356_p2), %s1052_s17, 4294967168  ;;  %s30_s15 = sadd.s32 1, %s1770_s15   ;;  %s2293_s7 = sld [smem:[#allocation17_spill]] }
 0x886   : > { %p27_p4 = scmp.ge.s32.totalorder %s30_s15, 6   ;;  %s2294_s29 = sld [smem:[#allocation26_spill]] }
 0x887   : > { %s2295_s13 = sld [smem:[#allocation19_spill]]  ;;  %s2301_s27 = smov %s1734_s28 }
 0x888   : > { %s2296_s10 = sld [smem:[#allocation27_spill]]  ;;  %s2303_s30 = smov %s1746_s9 }
 0x889   : > { %s2297_s11 = sld [smem:[#allocation22_spill]] }
 0x88a   : > { %s2298_s12 = sld [smem:[#allocation23_spill]] }
 0x88b   : > { %s2299_s25 = sld [smem:[#allocation24_spill]]  ;;  %s2302_s28 = smov %s2293_s7 }
 0x88c   : > { %s2300_s14 = sld [smem:[#allocation25_spill]] }
 0x88d   : > { %s2304_s9 = smov %s2295_s13  ;;  %29 = sbr.rel (!%p27_p4) target bundleno = 21 (0x15), region = 158 }
 0x891   : > { %s2305_s13 = smov %s2299_s25 }
 0x892   :  { %1058 = vsyncpa [#allocation4], 1 }
 0x893   :  { %1060 = vsyncpa [#allocation4 + $0x1], 1 }
 0x894   :  { %1061 = vsyncpa [#allocation7], 1 }
 0x895   :  { %1063 = vsyncpa [#allocation7 + $0x1], 1 }
 0x896   :  { %1064 = vsyncpa [#allocation10], 1 }
 0x897   :  { %1066 = vsyncpa [#allocation10 + $0x1], 1 }
 0x898   :  { %1067 = vsyncpa [#allocation5], 1 }
 0x899   :  { %1069 = vsyncpa [#allocation5 + $0x1], 1 }

</bundles_post_ra>
